<compile_context>
chip_gen: v7x
topology: tpu7x:2x2x1
jax: 0.10.0
libtpu: 0.0.40
codegen_flags: <defaults>
</compile_context>

<pallas_src>
import functools
import math

import jax
import jax.numpy as jnp
from jax.experimental import pallas as pl
from jax.experimental.pallas import tpu as pltpu


def _sum_encoder_kernel(x_ref, w1_ref, b1_ref, w2_ref, b2_ref, o_ref, *, set_size):
    # x_ref : (TB*S, C_in)  contiguous rows for TB examples
    # w1_ref: (C_in, dim)   b1_ref: (1, dim)
    # w2_ref: (dim, C_out)  b2_ref: (1, C_out)
    # o_ref : (TB, C_out)
    tb = o_ref.shape[0]

    # Linear 1 + ReLU on the flattened slab (MXU + VPU), accumulate in f32.
    h = jnp.dot(x_ref[...], w1_ref[...], preferred_element_type=jnp.float32)
    h = jnp.maximum(h + b1_ref[...].astype(jnp.float32), 0.0)          # (TB*S, dim)

    # Per-example sum over the set dimension as a (TB, TB*S) segment matmul:
    # seg[b, r] = 1  iff  b*set_size <= r < (b+1)*set_size.
    col = jax.lax.broadcasted_iota(jnp.int32, (tb, tb * set_size), 1)
    row = jax.lax.broadcasted_iota(jnp.int32, (tb, tb * set_size), 0)
    lo = row * set_size
    seg = jnp.logical_and(col >= lo, col < lo + set_size).astype(jnp.float32)
    hs = jnp.dot(seg, h, preferred_element_type=jnp.float32)           # (TB, dim)

    # Linear 2 on the reduced activations:
    #   sum_s (h_s @ W2 + b2) = (sum_s h_s) @ W2 + set_size * b2
    y = jnp.dot(hs, w2_ref[...], preferred_element_type=jnp.float32)
    y = y + jnp.float32(set_size) * b2_ref[...].astype(jnp.float32)
    o_ref[...] = y.astype(o_ref.dtype)


def _choose_batch_tile(batch, set_size, c_in, itemsize, target_bytes=1 << 20):
    """Largest batch tile whose x slab stays under ~target_bytes; keeps the
    segment matmul negligible and leaves several grid steps for pipelining /
    megacore sharding.  When TB < batch it is kept a multiple of 8 so the
    (8,128) tiling constraint on the output block is satisfied."""
    per_example = set_size * c_in * itemsize
    cap = max(1, target_bytes // max(per_example, 1))
    if cap >= batch:
        return batch
    tb = (min(cap, batch) // 8) * 8
    while tb >= 8:
        if batch % tb == 0:
            return tb
        tb -= 8
    return batch  # fall back to a single full-batch tile


def sum_encoder_forward(x, w1, b1, w2, b2, *, batch_tile=None):
    """x: [batch, set_size, C_in]; w1: [C_in, dim]; b1: [dim];
       w2: [dim, C_out]; b2: [C_out].  Returns [batch, C_out]."""
    B, S, C_in = x.shape
    assert w1.shape[0] == C_in
    dim = w1.shape[1]
    assert w2.shape[0] == dim
    C_out = w2.shape[1]
    dtype = x.dtype

    # Lane-dense 2-D view of the input + parameters materialized in x.dtype.
    x2d = x.reshape(B * S, C_in)
    w1 = w1.astype(dtype)
    w2 = w2.astype(dtype)
    b1 = b1.astype(dtype).reshape(1, dim)
    b2 = b2.astype(dtype).reshape(1, C_out)

    if batch_tile is None:
        batch_tile = _choose_batch_tile(B, S, C_in, jnp.dtype(dtype).itemsize)
    assert B % batch_tile == 0, "batch must be divisible by batch_tile"
    grid = (B // batch_tile,)

    kernel = functools.partial(_sum_encoder_kernel, set_size=S)
    return pl.pallas_call(
        kernel,
        out_shape=jax.ShapeDtypeStruct((B, C_out), dtype),
        grid_spec=pltpu.PrefetchScalarGridSpec(
            num_scalar_prefetch=0,
            grid=grid,
            in_specs=[
                pl.BlockSpec((batch_tile * S, C_in), lambda i: (i, 0)),
                pl.BlockSpec((C_in, dim), lambda i: (0, 0)),
                pl.BlockSpec((1, dim), lambda i: (0, 0)),
                pl.BlockSpec((dim, C_out), lambda i: (0, 0)),
                pl.BlockSpec((1, C_out), lambda i: (0, 0)),
            ],
            out_specs=pl.BlockSpec((batch_tile, C_out), lambda i: (i, 0)),
        ),
        compiler_params=pltpu.CompilerParams(
            dimension_semantics=("parallel",)),
    )(x2d, w1, b1, w2, b2)


def sum_encoder_ref(x, w1, b1, w2, b2):
    """Pure-JAX reference mirroring the PyTorch module line-by-line."""
    h = jnp.maximum(jnp.einsum("bsc,cd->bsd", x, w1) + b1, 0.0)
    y = jnp.einsum("bsd,de->bse", h, w2) + b2
    return y.sum(axis=1)


if __name__ == "__main__":
    batch, set_size = 4, 8
    input_channels, dim, output_channels = 16, 32, 8

    key = jax.random.PRNGKey(0)
    k1, k2, k3, k4, k5 = jax.random.split(key, 5)
    x = jax.random.normal(k1, (batch, set_size, input_channels), jnp.float32)
    w1 = jax.random.normal(k2, (input_channels, dim), jnp.float32) / math.sqrt(input_channels)
    b1 = jax.random.normal(k3, (dim,), jnp.float32) * 0.1
    w2 = jax.random.normal(k4, (dim, output_channels), jnp.float32) / math.sqrt(dim)
    b2 = jax.random.normal(k5, (output_channels,), jnp.float32) * 0.1

    out = sum_encoder_forward(x, w1, b1, w2, b2)
    out = jax.block_until_ready(out)

    ref = sum_encoder_ref(x, w1, b1, w2, b2)
    assert out.shape == (batch, output_channels)
    assert jnp.allclose(out, ref, atol=1e-4, rtol=1e-4), "mismatch vs reference"

    print("KERNEL_OK")
</pallas_src>

<mosaic_0001>
module attributes {stable_mosaic.version = 11 : i64} {
  func.func @_sum_encoder_kernel(%arg0: i32, %arg1: memref<32x16xf32, #tpu.memory_space<vmem>>, %arg2: memref<16x32xf32, #tpu.memory_space<vmem>>, %arg3: memref<1x32xf32, #tpu.memory_space<vmem>>, %arg4: memref<32x8xf32, #tpu.memory_space<vmem>>, %arg5: memref<1x8xf32, #tpu.memory_space<vmem>>, %arg6: memref<4x8xf32, #tpu.memory_space<vmem>>) attributes {dimension_semantics = [#tpu.dimension_semantics<parallel>], iteration_bounds = array<i64: 1>, scalar_prefetch = 0 : i64, scratch_operands = 0 : i64, tpu.core_type = #tpu.core_type<tc>, window_params = [{transform_indices = @transform_0, window_bounds = array<i64: 32, 16>}, {pipeline_mode = #tpu.pipeline_mode<synchronous>, transform_indices = @transform_1, window_bounds = array<i64: 16, 32>}, {pipeline_mode = #tpu.pipeline_mode<synchronous>, transform_indices = @transform_2, window_bounds = array<i64: 1, 32>}, {pipeline_mode = #tpu.pipeline_mode<synchronous>, transform_indices = @transform_3, window_bounds = array<i64: 32, 8>}, {pipeline_mode = #tpu.pipeline_mode<synchronous>, transform_indices = @transform_4, window_bounds = array<i64: 1, 8>}, {transform_indices = @transform_5, window_bounds = array<i64: 4, 8>}]} {
    %c0 = arith.constant 0 : index
    %c0_0 = arith.constant 0 : index
    %0 = vector.load %arg1[%c0, %c0_0] : memref<32x16xf32, #tpu.memory_space<vmem>>, vector<32x16xf32>
    %c0_1 = arith.constant 0 : index
    %c0_2 = arith.constant 0 : index
    %1 = vector.load %arg2[%c0_1, %c0_2] : memref<16x32xf32, #tpu.memory_space<vmem>>, vector<16x32xf32>
    %cst = arith.constant dense<0.000000e+00> : vector<32x32xf32>
    %2 = tpu.matmul %0, %1, %cst {dimension_numbers = #tpu.dot_dimension_numbers<[1], [0], [0], [1], [0, 0, 1, 1], [], []>} : vector<32x16xf32>, vector<16x32xf32>, vector<32x32xf32> -> vector<32x32xf32>
    %c0_3 = arith.constant 0 : index
    %c0_4 = arith.constant 0 : index
    %3 = vector.load %arg3[%c0_3, %c0_4] : memref<1x32xf32, #tpu.memory_space<vmem>>, vector<1x32xf32>
    %4 = vector.broadcast %3 : vector<1x32xf32> to vector<32x32xf32>
    %5 = arith.addf %2, %4 : vector<32x32xf32>
    %cst_5 = arith.constant 0.000000e+00 : f32
    %6 = vector.broadcast %cst_5 : f32 to vector<32x32xf32>
    %7 = arith.maximumf %5, %6 : vector<32x32xf32>
    %8 = tpu.iota {dimensions = array<i32: 1>} : vector<4x32xi32>
    %9 = tpu.iota {dimensions = array<i32: 0>} : vector<4x32xi32>
    %c8_i32 = arith.constant 8 : i32
    %10 = vector.broadcast %c8_i32 : i32 to vector<4x32xi32>
    %11 = arith.muli %9, %10 : vector<4x32xi32>
    %12 = arith.cmpi sge, %8, %11 : vector<4x32xi32>
    %c8_i32_6 = arith.constant 8 : i32
    %13 = vector.broadcast %c8_i32_6 : i32 to vector<4x32xi32>
    %14 = arith.addi %11, %13 : vector<4x32xi32>
    %15 = arith.cmpi slt, %8, %14 : vector<4x32xi32>
    %16 = arith.andi %12, %15 : vector<4x32xi1>
    %17 = arith.extui %16 : vector<4x32xi1> to vector<4x32xi32>
    %18 = arith.sitofp %17 : vector<4x32xi32> to vector<4x32xf32>
    %cst_7 = arith.constant dense<0.000000e+00> : vector<4x32xf32>
    %19 = tpu.matmul %18, %7, %cst_7 {dimension_numbers = #tpu.dot_dimension_numbers<[1], [0], [0], [1], [0, 0, 1, 1], [], []>} : vector<4x32xf32>, vector<32x32xf32>, vector<4x32xf32> -> vector<4x32xf32>
    %c0_8 = arith.constant 0 : index
    %c0_9 = arith.constant 0 : index
    %20 = vector.load %arg4[%c0_8, %c0_9] : memref<32x8xf32, #tpu.memory_space<vmem>>, vector<32x8xf32>
    %cst_10 = arith.constant dense<0.000000e+00> : vector<4x8xf32>
    %21 = tpu.matmul %19, %20, %cst_10 {dimension_numbers = #tpu.dot_dimension_numbers<[1], [0], [0], [1], [0, 0, 1, 1], [], []>} : vector<4x32xf32>, vector<32x8xf32>, vector<4x8xf32> -> vector<4x8xf32>
    %c0_11 = arith.constant 0 : index
    %c0_12 = arith.constant 0 : index
    %22 = vector.load %arg5[%c0_11, %c0_12] : memref<1x8xf32, #tpu.memory_space<vmem>>, vector<1x8xf32>
    %cst_13 = arith.constant 8.000000e+00 : f32
    %23 = vector.broadcast %cst_13 : f32 to vector<1x8xf32>
    %24 = arith.mulf %23, %22 : vector<1x8xf32>
    %25 = vector.broadcast %24 : vector<1x8xf32> to vector<4x8xf32>
    %26 = arith.addf %21, %25 : vector<4x8xf32>
    %c0_14 = arith.constant 0 : index
    %c0_15 = arith.constant 0 : index
    %27 = vector.load %arg6[%c0_14, %c0_15] : memref<4x8xf32, #tpu.memory_space<vmem>>, vector<4x8xf32>
    tpu.vector_store %arg6[%c0_14, %c0_15], %26 {strides = array<i32>} : memref<4x8xf32, #tpu.memory_space<vmem>>, vector<4x8xf32>,
    return
  }
  func.func @transform_0(%arg0: i32) -> (i32, i32) {
    %c0_i32 = arith.constant 0 : i32
    %c0_i32_0 = arith.constant 0 : i32
    return %arg0, %c0_i32 : i32, i32
  }
  func.func @transform_1(%arg0: i32) -> (i32, i32) {
    %c0_i32 = arith.constant 0 : i32
    %c0_i32_0 = arith.constant 0 : i32
    %c0_i32_1 = arith.constant 0 : i32
    return %c0_i32, %c0_i32_0 : i32, i32
  }
  func.func @transform_2(%arg0: i32) -> (i32, i32) {
    %c0_i32 = arith.constant 0 : i32
    %c0_i32_0 = arith.constant 0 : i32
    %c0_i32_1 = arith.constant 0 : i32
    return %c0_i32, %c0_i32_0 : i32, i32
  }
  func.func @transform_3(%arg0: i32) -> (i32, i32) {
    %c0_i32 = arith.constant 0 : i32
    %c0_i32_0 = arith.constant 0 : i32
    %c0_i32_1 = arith.constant 0 : i32
    return %c0_i32, %c0_i32_0 : i32, i32
  }
  func.func @transform_4(%arg0: i32) -> (i32, i32) {
    %c0_i32 = arith.constant 0 : i32
    %c0_i32_0 = arith.constant 0 : i32
    %c0_i32_1 = arith.constant 0 : i32
    return %c0_i32, %c0_i32_0 : i32, i32
  }
  func.func @transform_5(%arg0: i32) -> (i32, i32) {
    %c0_i32 = arith.constant 0 : i32
    %c0_i32_0 = arith.constant 0 : i32
    return %arg0, %c0_i32 : i32, i32
  }
}

</mosaic_0001>

<bundles_post_ra>
// kernel: tpu_custom_call.1
= control target key start
LH: loop header
LB: loop body
LE: loop exit
PB: predicated region body
PF: predicated region fallthrough
CT: control target
= control target key end

     0   :  { %vm34_vm0 = vcmask 130048   ;;  %s504_s0 = inlined_call_operand.vmem [shape: f32[32,16], index: 0, kind: input, shape index: {}]   ;;  %s505_s1 = inlined_call_operand.vmem [shape: f32[16,32], index: 1, kind: input, shape index: {}]   ;;  %s506_s2 = inlined_call_operand.vmem [shape: f32[1,32], index: 2, kind: input, shape index: {}]   ;;  %s507_s3 = inlined_call_operand.vmem [shape: f32[32,8], index: 3, kind: input, shape index: {}]   ;;  %s508_s4 = inlined_call_operand.vmem [shape: f32[1,8], index: 4, kind: input, shape index: {}]   ;;  %s509_s5 = inlined_call_operand.hbm [shape: f32[4,8], index: 5, kind: output, shape index: {}]  }
   0x1   :  { %v25_v0 = vld [vmem:[%s505_s1] sm:$0xff]  ;;  %v26_v1 = vld [vmem:[%s505_s1 + $0x8] sm:$0xff] }
   0x2   :  { %v21_v2 = vld [vmem:[%s504_s0] sm:$0xff]  ;;  %v378_v3 = vpack.c.bf16 %v26_v1, %v25_v0 }
   0x3   :  { %350 = vmatprep.mubr.msk.f32.mxu0 %vm34_vm0, %v21_v2 }
   0x4   :  { %10 = vsyncpa [#allocation3], 0  ;;  %379 = vmatprep.subr.bf16.mxu0 %v378_v3  ;;  %v22_v4 = vld [vmem:[%s504_s0 + $0x8] sm:$0xff]  ;;  %v23_v5 = vld [vmem:[%s504_s0 + $0x10] sm:$0xff]  ;;  %v422_v7 = vmov 0.0|0.0   ;;  %vm423_vm1 = vmmov 0   ;;  %v136_v15 = vlaneseq }
   0x5   :  { %381 = vmatpush3.bf16.msra.mxu0 %v378_v3  ;;  %v24_v6 = vld [vmem:[%s504_s0 + $0x18] sm:$0xff]  ;;  %382 = vmatprep.subr.bf16.mxu1 %v422_v7  ;;  %v424_v8 = vmov 0.0   ;;  %v221_v9 = vld [vmem:[%s507_s3] sm:$0xff]  ;;  %v222_v10 = vld [vmem:[%s507_s3 + $0x8] sm:$0xff]  ;;  %vm147_vm5 = vcmask 261120   ;;  %s425_s13 = smov [#allocation2]  }
   0x6   :  { %388 = vmatprep.subr.bf16.mxu0 %v422_v7  ;;  %364 = vmatprep.mubr.msk.f32.mxu1 %vm423_vm1, %v424_v8  ;;  %v223_v11 = vld [vmem:[%s507_s3 + $0x10] sm:$0xff]  ;;  %v389_v12 = vpack.c.bf16 %v222_v10, %v221_v9  ;;  %v224_v13 = vld [vmem:[%s507_s3 + $0x18] sm:$0xff]  ;;  %v139_v16 = vshrl.u32 %v136_v15, 7  ;;  %v322_v17 = vld [vmem:[%s506_s2] ss:$0 sm:$0xff]  ;;  %v137_v23 = vand.u32 127, %v136_v15 }
   0x7   :  { %v392_v14 = vpack.c.bf16 %v224_v13, %v223_v11  ;;  %v225_v38 = vld [vmem:[%s508_s4] sm:$0x1]  ;;  %s314_s14 = sshll.u32 %s425_s13, 4  ;;  %vm306_vm6 = vcmask 60416   ;;  %s315_s14 = int_to_ptr.vmem [resolvable:$true] %s314_s14 }
   0x8   :  { %351 = vmatmul.mubr.msk.f32.vlgmr.msra.gmra.mrb[0].mxu0 %vm34_vm0, %v22_v4  ;;  %v140_v18 = vmul.u32 8, %v139_v16  ;;  %v226_v39 = vmul.f32 8.0, %v225_v38  ;;  %v230_v40 = vsub.s32 0, %v139_v16  ;;  %s398_s15 = scalar_lea.vmem %s315_s14, 64  ;;  %p403_p1 = scmp.lt.s32.totalorder %s315_s14, %s315_s14 }
   0x9   :  { %353 = vmatprep.mubr.msk.f32.mxu0 %vm34_vm0, %v23_v5  ;;  %390 = vmatpush3.bf16.msra.mxu0 %v389_v12  ;;  %p399_p0 = scmp.ne.s32.totalorder %s315_s14, %s398_s15  ;;  %p404_p2 = scmp.lt.s32.totalorder %s398_s15, %s398_s15 }
   0xa   :  { %391 = vmatprep.subr.bf16.mxu0 %v422_v7  ;;  %v142_v24 = vadd.s32 8, %v140_v18  ;;  %vm141_vm2 = vcmp.ge.s32.totalorder %v137_v23, %v140_v18  ;;  %v231_v41 = vrot.slane %v226_v39, %v230_v40 }
   0xb   :  { %p405_p3 = por %p404_p2, %p403_p1 }
   0xc   :  { %354 = vmatmul.mubr.msk.f32.gmra.mrb[2].mxu0 %vm34_vm0, %v24_v6  ;;  %vm143_vm3 = vcmp.lt.s32.totalorder %v137_v23, %v142_v24 }
   0xd   :  { %375 = vmatprep.mubr.msk.f32.mxu0 %vm423_vm1, %v424_v8  ;;  %393 = vmatpush3.bf16.msra.mxu0 %v392_v14  ;;  %vm144_vm4 = vmand %vm141_vm2, %vm143_vm3  ;;  %p406_p4 = pnand %p405_p3, %p399_p0 }
   0xe   :  { %v327_v35 = vsel %vm144_vm4, 1.0, %v424_v8 }
  0xdb   :  { %v352_v19 = vpop.f32.mrb[0].mxu0 }
  0xdc   :  { %v119_v20 = vadd.f32 %v352_v19, %v322_v17  ;;  %v113_v21 = vpop.f32.mrb[1].mxu0 }
  0xdd   :  { %v114_v22 = vadd.f32 %v322_v17, %v113_v21 }
  0xde   :  { %v133_v25 = vmax.f32 %v119_v20, 0.0 }
  0xdf   :  { %v132_v26 = vmax.f32 %v114_v22, 0.0  ;;  %v355_v27 = vpop.f32.mrb[2].mxu0 }
  0xe0   :  { %v129_v28 = vadd.f32 %v355_v27, %v322_v17  ;;  %v123_v29 = vpop.f32.mrb[3].mxu0 }
  0xe1   :  { %v124_v30 = vadd.f32 %v322_v17, %v123_v29  ;;  %v383_v31 = vpack.c.bf16 %v133_v25, %v132_v26 }
  0xe2   :  { %v135_v32 = vmax.f32 %v129_v28, 0.0 }
  0xe3   :  { %v134_v33 = vmax.f32 %v124_v30, 0.0  ;;  %384 = vmatpush3.bf16.msra.mxu1 %v383_v31 }
  0xe4   :  { %385 = vmatprep.subr.bf16.mxu1 %v422_v7 }
  0xe5   :  { %v386_v34 = vpack.c.bf16 %v135_v32, %v134_v33 }
  0xe7   :  { %387 = vmatpush3.bf16.msra.mxu1 %v386_v34 }
  0xea   :  { %365 = vmatmul.mubr.msk.f32.vlgmr.msra.gmra.mrb[0].mxu1 %vm147_vm5, %v327_v35 }
 0x1bd   :  { %v217_v36 = vpop.f32.mrb[0].mxu1 }
 0x1be   :  { %v366_v37 = vpop.f32.mrb[1].mxu1  ;;  %376 = vmatmul.mubr.msk.f32.vlgmr.msra.gmra.mrb[4].mxu0 %vm147_vm5, %v217_v36 }
 0x291   :  { %v302_v42 = vpop.f32.mrb[4].mxu0 }
 0x292   :  { %v303_v43 = vadd.f32 %v302_v42, %v231_v41  ;;  %v377_v44 = vpop.f32.mrb[5].mxu0 }
 0x294   :  { %307 = vst.msk [vmem:[#allocation2] sm:$0xf] %vm306_vm6, %v303_v43 }
 0x295   :  { %409 = shalt.err (!%p406_p4)
}
 0x296   :  { %s410_s17 = scalar_lea.hbm %s509_s5, 64 }
 0x297   :  { %p411_p5 = scmp.ne.s32.totalorder %s509_s5, %s410_s17  ;;  %p414_p6 = scmp.lt.u32.totalorder %s410_s17, %s509_s5 }
 0x299   :  { %p416_p7 = pnand %p414_p6, %p411_p5 }
 0x29b   :  { %419 = shalt.err (!%p416_p7)
}
 0x29c   :  { %317 = dma.vmem_to_hbm [thread:$0]  %s315_s14, 64, %s509_s5, [#allocation3]  }
 0x29d   :  { %420 = dma.done.wait [#allocation3], 64  }
 0x29e   :  { %421 = vsyncadd [#allocation3], 4294967232 }
 0x29f   :  { %321 = vsyncpa [#allocation3], 1 }

</bundles_post_ra>
